<compile_context>
chip_gen: v6e
topology: v6e:2x2x1
jax: 0.10.0
libtpu: 0.0.40
codegen_flags: <defaults>
</compile_context>

<pallas_src>
import functools

import jax
import jax.numpy as jnp
from jax.experimental import pallas as pl
from jax.experimental.pallas import tpu as pltpu


def _round_up(x, m):
    return ((x + m - 1) // m) * m


def _kernel_single_k(w_ref, p_ref, s_ref, b_ref, o_ref, *, act):
    """out = act((W @ P) * scale + bias), whole contraction in one step.

    w_ref: (tc, K) bf16; p_ref: (K, thw) bf16; s_ref/b_ref: (tc, 1) f32;
    o_ref: (tc, thw). No accumulator scratch needed.
    """
    y = jnp.dot(w_ref[...], p_ref[...], preferred_element_type=jnp.float32)
    y = y * s_ref[...] + b_ref[...]
    if act:
        y = jnp.maximum(y, 0.0)
    o_ref[...] = y.astype(o_ref.dtype)


def _kernel_multi_k(w_ref, p_ref, s_ref, b_ref, o_ref, acc_ref, *, act):
    """K-tiled variant: f32 VMEM accumulator carried over the (last) K grid axis."""
    k = pl.program_id(3)
    part = jnp.dot(w_ref[...], p_ref[...], preferred_element_type=jnp.float32)

    @pl.when(k == 0)
    def _():
        acc_ref[...] = part          # direct init — no zero + read-modify-write

    @pl.when(k > 0)
    def _():
        acc_ref[...] += part

    @pl.when(k == pl.num_programs(3) - 1)
    def _():
        y = acc_ref[...] * s_ref[...] + b_ref[...]
        if act:
            y = jnp.maximum(y, 0.0)
        o_ref[...] = y.astype(o_ref.dtype)


def _grouped_matmul_bn_relu(patches, w_mat, scale, bias, act, out_dtype, groups):
    """patches: (N*G, Kp, HWp) bf16; w_mat: (G, Cp, Kp) bf16;
    scale/bias: (G, Cp, 1) f32.  Returns (N*G, Cp, HWp) in out_dtype."""
    BG, Kp, HWp = patches.shape
    G, Cp, _ = w_mat.shape
    assert G == groups

    # ---- tile selection (worst case ~10 MiB VMEM incl. double buffers) -------
    tc = Cp if Cp <= 512 else 256          # sublane dim of output / MXU rows
    thw = min(1024, HWp)                   # lane dim (HWp is a 128 multiple)
    if Kp <= 1024:
        tk = Kp                            # single K step -> no accumulator
    else:                                  # Kp is a 128 multiple in this branch
        tk = 512 if Kp % 512 == 0 else (256 if Kp % 256 == 0 else 128)

    gmap = (lambda b: 0) if G == 1 else (lambda b: b % G)
    k_steps = Kp // tk
    grid_c = pl.cdiv(Cp, tc)
    grid_hw = pl.cdiv(HWp, thw)

    if k_steps == 1:
        grid = (BG, grid_c, grid_hw)
        in_specs = [
            pl.BlockSpec((None, tc, tk), lambda b, i, j: (gmap(b), i, 0)),   # W
            pl.BlockSpec((None, tk, thw), lambda b, i, j: (b, 0, j)),        # P
            pl.BlockSpec((None, tc, 1), lambda b, i, j: (gmap(b), i, 0)),    # scale
            pl.BlockSpec((None, tc, 1), lambda b, i, j: (gmap(b), i, 0)),    # bias
        ]
        out_spec = pl.BlockSpec((None, tc, thw), lambda b, i, j: (b, i, j))
        kernel = functools.partial(_kernel_single_k, act=act)
        scratch = []
        semantics = ("parallel", "parallel", "parallel")
    else:
        grid = (BG, grid_c, grid_hw, k_steps)                    # K axis last
        in_specs = [
            pl.BlockSpec((None, tc, tk), lambda b, i, j, k: (gmap(b), i, k)),
            pl.BlockSpec((None, tk, thw), lambda b, i, j, k: (b, k, j)),
            pl.BlockSpec((None, tc, 1), lambda b, i, j, k: (gmap(b), i, 0)),
            pl.BlockSpec((None, tc, 1), lambda b, i, j, k: (gmap(b), i, 0)),
        ]
        out_spec = pl.BlockSpec((None, tc, thw), lambda b, i, j, k: (b, i, j))
        kernel = functools.partial(_kernel_multi_k, act=act)
        scratch = [pltpu.VMEM((tc, thw), jnp.float32)]
        semantics = ("parallel", "parallel", "parallel", "arbitrary")

    return pl.pallas_call(
        kernel,
        out_shape=jax.ShapeDtypeStruct((BG, Cp, HWp), out_dtype),
        grid=grid,
        in_specs=in_specs,
        out_specs=out_spec,
        scratch_shapes=scratch,
        compiler_params=pltpu.CompilerParams(
            dimension_semantics=semantics,
            vmem_limit_bytes=32 * 1024 * 1024,   # safe on v7x's 64 MiB VMEM too
        ),
    )(w_mat, patches, scale, bias)


def conv_bn_relu(x, params, *, stride=1, padding=0, groups=1, act=True, eps=1e-5):
    """Forward pass of ConvBNReluLayer (BatchNorm in inference/eval mode)."""
    weight = params["conv_w"]      # (C_out, C_in // groups, kh, kw)
    conv_b = params["conv_b"]      # (C_out,)
    gamma, beta = params["bn_w"], params["bn_b"]
    rmean, rvar = params["bn_rm"], params["bn_rv"]

    N, C_in, H, W = x.shape
    C_out, Cin_g, kh, kw = weight.shape
    G = groups
    assert C_in == Cin_g * G and C_out % G == 0
    Cout_g = C_out // G
    Kg = Cin_g * kh * kw
    H_out = (H + 2 * padding - kh) // stride + 1
    W_out = (W + 2 * padding - kw) // stride + 1
    HW = H_out * W_out

    # --- fold BatchNorm (eval) + conv bias into per-channel scale / bias ------
    # TODO(synk): train-mode BatchNorm (batch statistics / running-stat update)
    # has no clean fused equivalent here; eval/inference semantics only.
    inv_std = 1.0 / jnp.sqrt(rvar.astype(jnp.float32) + eps)
    scale = gamma.astype(jnp.float32) * inv_std
    bias = (conv_b.astype(jnp.float32) - rmean.astype(jnp.float32)) * scale \
        + beta.astype(jnp.float32)

    # --- padded sizes: lane-dense HW, sublane-granule Cout, bounded K ---------
    # TODO(synk): depthwise / Cout_g == 1 shapes still use the MXU path; a
    # dedicated VPU elementwise kernel would avoid the wasted MXU rows there.
    HW_p = _round_up(HW, 128)
    Cp = _round_up(Cout_g, 8) if Cout_g <= 512 else _round_up(Cout_g, 128)
    Kp = Kg if (Kg <= 1024 or Kg % 128 == 0) else _round_up(Kg, 128)

    # --- patches in NCHW-native (N*G, Kg, HW) layout, bf16 before extraction --
    xb = x.astype(jnp.bfloat16)
    if kh == 1 and kw == 1 and padding == 0:
        xs = xb if stride == 1 else xb[:, :, ::stride, ::stride]
        patches = xs.reshape(N * G, Kg, HW)          # pure reshape, no im2col
    else:
        # TODO(synk): KxK patch extraction is still materialized once in HBM
        # (one bf16 write + one read); fusing it into the kernel via halo-tiled
        # BlockSpecs / manual DMA would remove this pass entirely.
        xp = jnp.pad(xb, ((0, 0), (0, 0), (padding, padding), (padding, padding)))
        cols = [
            xp[:, :, i:i + stride * H_out:stride, j:j + stride * W_out:stride]
            .reshape(N, G, Cin_g, 1, HW)
            for i in range(kh) for j in range(kw)
        ]
        # K ordering per group: channel-major, kernel-position-minor — matches
        # the natural (Cout_g, Cin_g, kh, kw) -> (Cout_g, Kg) weight reshape.
        patches = jnp.concatenate(cols, axis=3).reshape(N * G, Kg, HW)
    if HW_p != HW or Kp != Kg:
        patches = jnp.pad(patches, ((0, 0), (0, Kp - Kg), (0, HW_p - HW)))

    # --- weights / BN params in (G, Cp, Kp) orientation, bf16 ------------------
    # (Static in inference; this prep could be hoisted/cached by the caller.)
    w_mat = weight.reshape(G, Cout_g, Kg).astype(jnp.bfloat16)
    w_mat = jnp.pad(w_mat, ((0, 0), (0, Cp - Cout_g), (0, Kp - Kg)))
    scale_p = jnp.pad(scale.reshape(G, Cout_g, 1), ((0, 0), (0, Cp - Cout_g), (0, 0)))
    bias_p = jnp.pad(bias.reshape(G, Cout_g, 1), ((0, 0), (0, Cp - Cout_g), (0, 0)))

    out = _grouped_matmul_bn_relu(patches, w_mat, scale_p, bias_p, act,
                                  x.dtype, G)          # (N*G, Cp, HW_p)
    out = out[:, :Cout_g, :HW]                         # strip channel / lane pad
    return out.reshape(N, C_out, H_out, W_out)         # already NCHW, no transpose


def init_params(key, in_channels, out_channels, kernel_size, groups):
    kc, kb = jax.random.split(key)
    fan_in = (in_channels // groups) * kernel_size * kernel_size
    bound = 1.0 / (fan_in ** 0.5)
    conv_w = jax.random.uniform(
        kc, (out_channels, in_channels // groups, kernel_size, kernel_size),
        jnp.float32, -bound, bound)
    conv_b = jax.random.uniform(kb, (out_channels,), jnp.float32, -bound, bound)
    return dict(
        conv_w=conv_w,
        conv_b=conv_b,
        bn_w=jnp.ones((out_channels,), jnp.float32),
        bn_b=jnp.zeros((out_channels,), jnp.float32),
        bn_rm=jnp.zeros((out_channels,), jnp.float32),
        bn_rv=jnp.ones((out_channels,), jnp.float32),
    )


def _reference(x, params, stride, padding, groups, act, eps=1e-5):
    y = jax.lax.conv_general_dilated(
        x, params["conv_w"], (stride, stride), [(padding, padding)] * 2,
        dimension_numbers=("NCHW", "OIHW", "NCHW"),
        feature_group_count=groups)
    y = y + params["conv_b"][None, :, None, None]
    inv = 1.0 / jnp.sqrt(params["bn_rv"] + eps)
    y = ((y - params["bn_rm"][None, :, None, None]) * inv[None, :, None, None]
         * params["bn_w"][None, :, None, None] + params["bn_b"][None, :, None, None])
    if act:
        y = jnp.maximum(y, 0.0)
    return y


if __name__ == "__main__":
    key = jax.random.PRNGKey(0)
    kx, kp = jax.random.split(key)

    # --- Test 1: ConvBNReluLayer(4, 8) defaults: 1x1, stride 1, pad 0, group 1 ---
    x = jax.random.normal(kx, (2, 4, 16, 16), jnp.float32)
    params = init_params(kp, 4, 8, 1, 1)
    out = conv_bn_relu(x, params, stride=1, padding=0, groups=1, act=True)
    out = jax.block_until_ready(out)
    ref = _reference(x, params, 1, 0, 1, True)
    assert out.shape == ref.shape == (2, 8, 16, 16)
    assert jnp.allclose(out, ref, atol=3e-2, rtol=3e-2)

    # --- Test 2: general path — 3x3 grouped strided conv (exercise KxK + groups) ---
    params2 = init_params(kp, 4, 8, 3, 2)
    out2 = conv_bn_relu(x, params2, stride=2, padding=1, groups=2, act=True)
    out2 = jax.block_until_ready(out2)
    ref2 = _reference(x, params2, 2, 1, 2, True)
    assert out2.shape == ref2.shape == (2, 8, 8, 8)
    assert jnp.allclose(out2, ref2, atol=3e-2, rtol=3e-2)

    print("KERNEL_OK")
</pallas_src>

<mosaic_0001>
module attributes {stable_mosaic.version = 11 : i64} {
  func.func @_kernel_single_k(%arg0: i32, %arg1: i32, %arg2: i32, %arg3: memref<1x8x4xbf16, #tpu.memory_space<vmem>>, %arg4: memref<1x4x256xbf16, #tpu.memory_space<vmem>>, %arg5: memref<1x8x1xf32, #tpu.memory_space<vmem>>, %arg6: memref<1x8x1xf32, #tpu.memory_space<vmem>>, %arg7: memref<1x8x256xf32, #tpu.memory_space<vmem>>) attributes {dimension_semantics = [#tpu.dimension_semantics<parallel>, #tpu.dimension_semantics<parallel>, #tpu.dimension_semantics<parallel>], iteration_bounds = array<i64: 2, 1, 1>, scalar_prefetch = 0 : i64, scratch_operands = 0 : i64, tpu.core_type = #tpu.core_type<tc>, window_params = [{transform_indices = @transform_0, window_bounds = array<i64: 1, 8, 4>}, {transform_indices = @transform_1, window_bounds = array<i64: 1, 4, 256>}, {transform_indices = @transform_2, window_bounds = array<i64: 1, 8, 1>}, {transform_indices = @transform_3, window_bounds = array<i64: 1, 8, 1>}, {transform_indices = @transform_4, window_bounds = array<i64: 1, 8, 256>}]} {
    %c0 = arith.constant 0 : index
    %c0_0 = arith.constant 0 : index
    %c0_1 = arith.constant 0 : index
    %0 = vector.load %arg3[%c0, %c0_0, %c0_1] : memref<1x8x4xbf16, #tpu.memory_space<vmem>>, vector<1x8x4xbf16>
    %1 = vector.shape_cast %0 : vector<1x8x4xbf16> to vector<8x4xbf16>
    %c0_2 = arith.constant 0 : index
    %c0_3 = arith.constant 0 : index
    %c0_4 = arith.constant 0 : index
    %2 = vector.load %arg4[%c0_2, %c0_3, %c0_4] : memref<1x4x256xbf16, #tpu.memory_space<vmem>>, vector<1x4x256xbf16>
    %3 = vector.shape_cast %2 : vector<1x4x256xbf16> to vector<4x256xbf16>
    %cst = arith.constant dense<0.000000e+00> : vector<8x256xf32>
    %4 = tpu.matmul %1, %3, %cst {dimension_numbers = #tpu.dot_dimension_numbers<[1], [0], [0], [1], [0, 0, 1, 1], [], []>} : vector<8x4xbf16>, vector<4x256xbf16>, vector<8x256xf32> -> vector<8x256xf32>
    %c0_5 = arith.constant 0 : index
    %c0_6 = arith.constant 0 : index
    %c0_7 = arith.constant 0 : index
    %5 = vector.load %arg5[%c0_5, %c0_6, %c0_7] : memref<1x8x1xf32, #tpu.memory_space<vmem>>, vector<1x8x1xf32>
    %6 = vector.shape_cast %5 : vector<1x8x1xf32> to vector<8x1xf32>
    %7 = vector.broadcast %6 : vector<8x1xf32> to vector<8x256xf32>
    %8 = arith.mulf %4, %7 : vector<8x256xf32>
    %c0_8 = arith.constant 0 : index
    %c0_9 = arith.constant 0 : index
    %c0_10 = arith.constant 0 : index
    %9 = vector.load %arg6[%c0_8, %c0_9, %c0_10] : memref<1x8x1xf32, #tpu.memory_space<vmem>>, vector<1x8x1xf32>
    %10 = vector.shape_cast %9 : vector<1x8x1xf32> to vector<8x1xf32>
    %11 = vector.broadcast %10 : vector<8x1xf32> to vector<8x256xf32>
    %12 = arith.addf %8, %11 : vector<8x256xf32>
    %cst_11 = arith.constant 0.000000e+00 : f32
    %13 = vector.broadcast %cst_11 : f32 to vector<8x256xf32>
    %14 = arith.maximumf %12, %13 : vector<8x256xf32>
    %c0_12 = arith.constant 0 : index
    %c0_13 = arith.constant 0 : index
    %c0_14 = arith.constant 0 : index
    %15 = vector.load %arg7[%c0_12, %c0_13, %c0_14] : memref<1x8x256xf32, #tpu.memory_space<vmem>>, vector<1x8x256xf32>
    %16 = vector.shape_cast %15 : vector<1x8x256xf32> to vector<8x256xf32>
    %17 = vector.shape_cast %14 : vector<8x256xf32> to vector<1x8x256xf32>
    tpu.vector_store %arg7[%c0_12, %c0_13, %c0_14], %17 {strides = array<i32>} : memref<1x8x256xf32, #tpu.memory_space<vmem>>, vector<1x8x256xf32>,
    return
  }
  func.func @transform_0(%arg0: i32, %arg1: i32, %arg2: i32) -> (i32, i32, i32) {
    %c0_i32 = arith.constant 0 : i32
    %c0_i32_0 = arith.constant 0 : i32
    %c0_i32_1 = arith.constant 0 : i32
    return %c0_i32, %arg1, %c0_i32_0 : i32, i32, i32
  }
  func.func @transform_1(%arg0: i32, %arg1: i32, %arg2: i32) -> (i32, i32, i32) {
    %c0_i32 = arith.constant 0 : i32
    %c0_i32_0 = arith.constant 0 : i32
    return %arg0, %c0_i32, %arg2 : i32, i32, i32
  }
  func.func @transform_2(%arg0: i32, %arg1: i32, %arg2: i32) -> (i32, i32, i32) {
    %c0_i32 = arith.constant 0 : i32
    %c0_i32_0 = arith.constant 0 : i32
    %c0_i32_1 = arith.constant 0 : i32
    return %c0_i32, %arg1, %c0_i32_0 : i32, i32, i32
  }
  func.func @transform_3(%arg0: i32, %arg1: i32, %arg2: i32) -> (i32, i32, i32) {
    %c0_i32 = arith.constant 0 : i32
    %c0_i32_0 = arith.constant 0 : i32
    %c0_i32_1 = arith.constant 0 : i32
    return %c0_i32, %arg1, %c0_i32_0 : i32, i32, i32
  }
  func.func @transform_4(%arg0: i32, %arg1: i32, %arg2: i32) -> (i32, i32, i32) {
    %c0_i32 = arith.constant 0 : i32
    return %arg0, %arg1, %arg2 : i32, i32, i32
  }
}

</mosaic_0001>

<bundles_post_ra>
// kernel: tpu_custom_call.1
= control target key start
LH: loop header
LB: loop body
LE: loop exit
PB: predicated region body
PF: predicated region fallthrough
CT: control target
= control target key end

     0   :  { %9 = vsyncpa [#allocation3], 0  ;;  %s807_s0 = inlined_call_operand.vmem [shape: bf16[1,8,4], index: 0, kind: input, shape index: {}]   ;;  %s808_s1 = inlined_call_operand.vmem [shape: bf16[2,4,256], index: 1, kind: input, shape index: {}]   ;;  %s809_s2 = inlined_call_operand.vmem [shape: f32[1,8,1], index: 2, kind: input, shape index: {}]   ;;  %s810_s3 = inlined_call_operand.vmem [shape: f32[1,8,1], index: 3, kind: input, shape index: {}]   ;;  %s811_s4 = inlined_call_operand.hbm [shape: f32[2,8,256], index: 4, kind: output, shape index: {}]  }
   0x1   :  { %11 = vsyncpa [#allocation3 + $0x1], 0  ;;  %s699_s15 = smov 0   ;;  %s701_s16 = smov 0  }
   0x2   :  { %s703_s17 = smov 0   ;;  %s705_s18 = smov 0  }
   0x3   :  { %s707_s19 = smov 0   ;;  %s709_s20 = smov 0  }
   0x4 LB: > { %s516_s21 = sadd.s32 4294967295, %s670_s20   ;;  %s517_s22 = sadd.s32 4294967294, %s670_s20   ;;  %s670_s20 = sphi %s709_s20, %s17_s20   ;;  %s666_s19 = sphi %s707_s19, %s818_s19   ;;  %s662_s18 = sphi %s705_s18, %s817_s18   ;;  %s658_s17 = sphi %s703_s17, %s816_s17   ;;  %s654_s16 = sphi %s701_s16, %s815_s16   ;;  %s650_s15 = sphi %s699_s15, %s814_s15  }
   0x5   : > { %s36_s23 = sadd.s32 1, %s666_s19  ;;  %s153_s24 = sadd.s32 1, %s658_s17 }
   0x6   : > { %p38_p0 = scmp.ge.s32.totalorder %s36_s23, 2  ;;  %p163_p1 = scmp.ne.s32.totalorder %s658_s17, %s654_s16 }
   0x7   : > { %p164_p2 = scmp.eq.s32.totalorder %s516_s21, 1  ;;  %p169_p3 = scmp.ne.s32.totalorder %s654_s16, %s650_s15 }
   0x8   : > { %s820_s23 = smov (%p38_p0, %s36_s23), 0  ;;  %p170_p5 = scmp.eq.s32.totalorder %s517_s22, 1 }
   0x9   : > { %p739_p4 = por %p164_p2, %p163_p1  ;;  %s146_s26 = ssub.s32 %s666_s19, %s820_s23 }
   0xa   : > { %p523_p6 = scmp.ge.s32.totalorder %s670_s20, 1  ;;  %p151_p7 = scmp.eq.s32.totalorder %s146_s26, 0 }
   0xb   : > { %p746_p8 = por %p170_p5, %p169_p3  ;;  %p222_p9 = scmp.lt.s32.totalorder %s670_s20, 3 }
   0xc   : > { %s752_s28 = scalar_select %p151_p7, %s658_s17, %s153_s24  }
   0xd   : > { %p223_p10 = pnand %p523_p6, %p222_p9 }
   0xe   : > { %p269_p11 = scmp.lt.s32.totalorder (!%p223_p10), %s662_s18, 1  ;;  %s261_s14 = sand.u32 (!%p223_p10), 1, %s654_s16  }
   0xf   : > { %226 = sbr.rel (%p223_p10) target bundleno = 245 (0xf5), region = 36  ;;  %s524_s21 = sshll.u32 (!%p223_p10), %s261_s14, 4 }
  0x10   : > { %s536_s22 = sshll.u32 (!%p223_p10), %s662_s18, 8  ;;  %s263_s24 = scalar_lea.vmem (!%p223_p10), [#allocation2], %s524_s21 }
  0x11   : > { %s390_s26 = sshll.u32 (!%p223_p10), %s263_s24, 4  ;;  %s372_s6 = scalar_lea.sflag (!%p223_p10), [#allocation3], %s261_s14  ;;  %s391_s26 = int_to_ptr.vmem [resolvable:$true] %s390_s26 }
  0x12   : > { %s594_s7 = scalar_lea.vmem (!%p223_p10), %s391_s26, 256 }
  0x13   : > { %p595_p12 = scmp.ne.s32.totalorder (!%p223_p10), %s391_s26, %s594_s7 }
  0x14   : > { %v672_v0 = vmov 0   ;;  %v351_v1 = vld [vmem:[%s809_s2] sm:$0xff]  ;;  %s270_s5 = scalar_select %p269_p11, %s662_s18, 1  ;;  %vm303_vm0 = vcmask 1041408   ;;  %vm299_vm1 = vcmask 31744  }
  0x15   : > { %342 = vmatprep.mubr.bf16.mxu0 %v672_v0  ;;  %593 = vset.pattern.permute.xlu0 %v672_v0  ;;  %v359_v2 = vld [vmem:[%s810_s3] sm:$0xff]  ;;  %p596_p13 = pnand %p595_p12, %p739_p4  ;;  %s673_s18 = smov [#allocation2]  }
  0x16   : > { %354 = vperm.xlu0 %593, %v351_v1   ;;  %s535_s8 = sshll.u32 %s270_s5, 2  ;;  %v288_v6 = vld [vmem:[%s807_s0] sm:$0xf]  ;;  %s388_s5 = scalar_lea.hbm %s811_s4, %s536_s22 }
  0x17   : > { %s276_s11 = scalar_lea.vmem %s808_s1, %s535_s8  ;;  %p597_p0 = pneg %p596_p13 }
  0x18   : > { %v527_v3 = vld.sshfl [vmem:[%s276_s11] sm:$0x33 pattern:$0x76325410]  ;;  %s598_s8 = sshll.u32 %s673_s18, 4  ;;  %s599_s8 = int_to_ptr.vmem [resolvable:$false] %s598_s8 }
  0x19   : > { %v298_v4 = vcombine.high %v527_v3, %v527_v3  ;;  %v305_v5 = vsel %vm303_vm0, %v527_v3, 0  ;;  %s600_s9 = scalar_lea.vmem %s599_s8, 512  ;;  %p601_p1 = scmp.lt.s32.totalorder %s391_s26, %s599_s8 }
  0x1a   : > { %362 = vperm.xlu0 %593, %v359_v2   ;;  %p602_p2 = scmp.lt.s32.totalorder %s600_s9, %s594_s7 }
  0x1b   : > { %528 = vmatprep.subr.msk.bf16.mxu0 %vm303_vm0, %v298_v4 }
  0x1c   : > { %325 = vmatpush1.bf16.msra.mxu0 %v305_v5  ;;  %p603_p3 = por %p602_p2, %p601_p1 }
  0x1e   : > { %p604_p5 = pnand %p603_p3, %p597_p0 }
  0x1f   : > { %529 = vmatmul.mubr.msk.bf16.vlgmr.msra.gmra.mxu0 %vm299_vm1, %v288_v6 }
  0x91   : > { %v355_v7 = vpop.permute.xlu0 %354 }
  0x95   : > { %v363_v10 = vpop.permute.xlu0 %362 }
  0xdf   : > { %v344_v8 = vpop.f32.mrf.mxu0 }
  0xe0   : > { %v357_v9 = vmul.f32 %v355_v7, %v344_v8 }
  0xe1   : > { %v346_v11 = vpop.f32.mrf.mxu0 }
  0xe2   : > { %v365_v12 = vadd.f32 %v363_v10, %v357_v9  ;;  %v358_v13 = vmul.f32 %v355_v7, %v346_v11 }
  0xe3   : > { %v348_v14 = vpop.f32.mrf.mxu0 }
  0xe4   : > { %v367_v15 = vmax.f32 %v365_v12, 0.0  ;;  %v366_v16 = vadd.f32 %v363_v10, %v358_v13 }
  0xe5   : > { %v349_v17 = vpop.f32.mrf.mxu0 }
  0xe6   : > { %369 = vst [vmem:[%s263_s24] sm:$0xff] %v367_v15  ;;  %v368_v18 = vmax.f32 %v366_v16, 0.0 }
  0xe8   : > { %370 = vst [vmem:[%s263_s24 + $0x8] sm:$0xff] %v368_v18 }
  0xe9   : > { %607 = shalt.err (!%p604_p5)
}
  0xea   : > { %s608_s10 = scalar_lea.hbm %s388_s5, 256  ;;  %s612_s13 = scalar_lea.hbm %s811_s4, 512 }
  0xeb   : > { %p609_p6 = scmp.ne.s32.totalorder %s388_s5, %s608_s10  ;;  %p613_p10 = scmp.lt.s32.totalorder %s388_s5, %s811_s4 }
  0xec   : > { %p614_p11 = scmp.lt.s32.totalorder %s612_s13, %s608_s10 }
  0xed   : > { %p610_p7 = pnand %p609_p6, %p739_p4 }
  0xee   : > { %p615_p12 = por %p614_p11, %p613_p10 }
  0xef   : > { %p611_p9 = pneg %p610_p7 }
  0xf1   : > { %p616_p13 = pnand %p615_p12, %p611_p9 }
  0xf3   : > { %619 = shalt.err (!%p616_p13)
}
  0xf4   : > { %537 = dma.vmem_to_hbm [thread:$0]  (%p739_p4), %s391_s26, 256, %s388_s5, %s372_s6  }
  0xf5 PF: > { %p543_p0 = scmp.ge.s32.totalorder %s670_s20, 2  ;;  %s402_s22 = sand.u32 1, %s650_s15  }
  0xf6   : > { %s403_s24 = scalar_lea.sflag [#allocation3], %s402_s22 }
  0xf7   : > { %p540_p1 = pnand %p543_p0, %p746_p8 }
  0xf9   : > { %p541_p2 = pneg %p540_p1 }
  0xfb   : > { %645 = dma.done.wait (%p541_p2), %s403_s24, 256  }
  0xfc   : > { %647 = vsyncadd (%p541_p2), %s403_s24, 4294967040  ;;  %s17_s20 = sadd.s32 1, %s670_s20   ;;  %s814_s15 = smov %s654_s16 }
  0xfd   : > { %p14_p3 = scmp.ge.s32.totalorder %s17_s20, 4   ;;  %s815_s16 = smov %s658_s17 }
  0xfe   : > { %s816_s17 = smov %s752_s28  ;;  %s817_s18 = smov %s666_s19 }
  0xff   : > { %s818_s19 = smov %s820_s23  ;;  %16 = sbr.rel (!%p14_p3) target bundleno = 4 (0x4), region = 80 }
 0x104   :  { %408 = vsyncpa [#allocation3], 1 }
 0x105   :  { %410 = vsyncpa [#allocation3 + $0x1], 1 }

</bundles_post_ra>
